<compile_context>
chip_gen: v7x
topology: tpu7x:2x2x1
jax: 0.10.0
libtpu: 0.0.40
codegen_flags: <defaults>
</compile_context>

<pallas_src>
import jax
import jax.numpy as jnp
from jax.experimental import pallas as pl
from jax.experimental.pallas import tpu as pltpu


_TARGET_BLOCK_BYTES = 8 * 1024 * 1024     # ~8 MiB per block (v7x/v6e sizing)
_VMEM_LIMIT_BYTES = 48 * 1024 * 1024      # 4 x 8 MiB double buffers + headroom;
                                          # < 64 MiB physical VMEM on v7x.
_FLAT_BLOCK_ELEMS = 256 * 1024            # conservative cap for rank-1 fallback blocks


def _identity_kernel(x_ref, o_ref):
    # Pass-through of the current VMEM tile.
    o_ref[...] = x_ref[...]


def _sublane_multiple(dtype) -> int:
    # Packed-sublane tile: 8 rows for 4-byte, 16 for 2-byte, 32 for 1-byte.
    itemsize = jnp.dtype(dtype).itemsize
    return {4: 8, 2: 16, 1: 32}.get(itemsize, 8)


def _compiler_params():
    return pltpu.CompilerParams(
        dimension_semantics=("parallel",),
        vmem_limit_bytes=_VMEM_LIMIT_BYTES,
    )


def _cost_estimate(n_elems: int, dtype) -> pl.CostEstimate:
    # Pure bandwidth-bound op: read n + write n bytes, zero flops.
    return pl.CostEstimate(
        flops=0,
        transcendentals=0,
        bytes_accessed=2 * n_elems * jnp.dtype(dtype).itemsize,
    )


def _copy_slab(x2d: jax.Array) -> jax.Array:
    """Pallas tiled copy of a 2D (rows, lanes) slab; lanes % 128 == 0."""
    rows, lanes = x2d.shape
    dtype = x2d.dtype
    itemsize = jnp.dtype(dtype).itemsize
    sub = _sublane_multiple(dtype)

    # Rows per block: ~_TARGET_BLOCK_BYTES, rounded down to the packed sublane
    # tile so vregs stay fully packed for bf16/int8 as well as f32.
    block_rows = (_TARGET_BLOCK_BYTES // (lanes * itemsize)) // sub * sub
    block_rows = max(sub, block_rows)
    if block_rows >= rows:
        if rows >= 2 * sub:
            # v7x has 2 TensorCores: keep the "parallel" grid axis >= 2 blocks
            # so both cores can issue DMAs for mid-size arrays.
            block_rows = pl.cdiv(pl.cdiv(rows, 2), sub) * sub
        else:
            # Whole array in one block (block shape == array shape is legal
            # even when rows is not a sublane multiple).
            block_rows = rows
    grid = (pl.cdiv(rows, block_rows),)

    return pl.pallas_call(
        _identity_kernel,
        out_shape=jax.ShapeDtypeStruct((rows, lanes), dtype),
        grid_spec=pltpu.PrefetchScalarGridSpec(
            num_scalar_prefetch=0,
            grid=grid,
            in_specs=[pl.BlockSpec((block_rows, lanes), lambda i: (i, 0))],
            out_specs=pl.BlockSpec((block_rows, lanes), lambda i: (i, 0)),
        ),
        compiler_params=_compiler_params(),
        cost_estimate=_cost_estimate(rows * lanes, dtype),
    )(x2d)


def _copy_flat(flat: jax.Array) -> jax.Array:
    """Rank-1 tiled copy for sizes that are not a multiple of 128.

    Pallas masks the ragged final block, so the total HBM traffic is exactly
    2*n bytes (no pad / slice round trips).  Blocks are kept modest so the
    rank-1 VMEM layout stays comfortably inside the scoped limit.
    """
    n = flat.shape[0]
    dtype = flat.dtype

    block_n = min(_FLAT_BLOCK_ELEMS, pl.cdiv(n, 128) * 128)
    if block_n >= n:
        block_n = n  # block shape == full array shape is always legal
    grid = (pl.cdiv(n, block_n),)

    return pl.pallas_call(
        _identity_kernel,
        out_shape=jax.ShapeDtypeStruct((n,), dtype),
        grid_spec=pltpu.PrefetchScalarGridSpec(
            num_scalar_prefetch=0,
            grid=grid,
            in_specs=[pl.BlockSpec((block_n,), lambda i: (i,))],
            out_specs=pl.BlockSpec((block_n,), lambda i: (i,)),
        ),
        compiler_params=_compiler_params(),
        cost_estimate=_cost_estimate(n, dtype),
    )(flat)


def identity(x: jax.Array, *, materialize: bool = True) -> jax.Array:
    """Pallas identity: returns a tensor equal to x (same shape/dtype).

    With materialize=False (or empty input) this is the true nn.Identity:
    return x with zero HBM traffic and no kernel launch.  With
    materialize=True a distinct output buffer is produced via a single
    bandwidth-bound Pallas copy (exactly 2*n bytes of HBM traffic).
    """
    if not materialize or x.size == 0:
        return x

    orig_shape = x.shape
    n = x.size
    flat = x.reshape(-1)

    if n % 128 == 0:
        # Aligned fast path: pure (free) reshape into a lane-dense 2D slab.
        # Pick the widest last dim that divides n so stores stay unmasked and
        # DMA descriptors stay large.
        lanes = 128
        for w in (4096, 2048, 1024, 512, 256):
            if n % w == 0:
                lanes = w
                break
        out2d = _copy_slab(flat.reshape(n // lanes, lanes))
        return out2d.reshape(orig_shape)

    # Unaligned sizes: rank-1 tiled copy with a masked ragged final block.
    return _copy_flat(flat).reshape(orig_shape)


if __name__ == "__main__":
    key = jax.random.PRNGKey(0)
    # NCHW-shaped example input consistent with typical conv-module usage.
    x = jax.random.normal(key, (2, 4, 16, 16), dtype=jnp.float32)

    y = identity(x)
    jax.block_until_ready(y)
    assert y.shape == x.shape and y.dtype == x.dtype
    assert bool(jnp.all(y == x))

    # Exercise the unaligned (non-multiple-of-128) path as well.
    x_odd = jax.random.normal(jax.random.PRNGKey(0), (7, 13), dtype=jnp.float32)
    y_odd = identity(x_odd)
    jax.block_until_ready(y_odd)
    assert y_odd.shape == x_odd.shape and bool(jnp.all(y_odd == x_odd))

    # Zero-copy short-circuit (true nn.Identity semantics: no HBM traffic).
    assert identity(x, materialize=False) is x

    print("KERNEL_OK")
</pallas_src>

<mosaic_0001>
module attributes {stable_mosaic.version = 11 : i64} {
  func.func @_identity_kernel(%arg0: i32, %arg1: memref<1x2048xf32, #tpu.memory_space<vmem>>, %arg2: memref<1x2048xf32, #tpu.memory_space<vmem>>) attributes {dimension_semantics = [#tpu.dimension_semantics<parallel>], iteration_bounds = array<i64: 1>, scalar_prefetch = 0 : i64, scratch_operands = 0 : i64, tpu.core_type = #tpu.core_type<tc>, window_params = [{transform_indices = @transform_0, window_bounds = array<i64: 1, 2048>}, {transform_indices = @transform_1, window_bounds = array<i64: 1, 2048>}]} {
    %c0 = arith.constant 0 : index
    %c0_0 = arith.constant 0 : index
    %0 = vector.load %arg1[%c0, %c0_0] : memref<1x2048xf32, #tpu.memory_space<vmem>>, vector<1x2048xf32>
    %c0_1 = arith.constant 0 : index
    %c0_2 = arith.constant 0 : index
    %1 = vector.load %arg2[%c0_1, %c0_2] : memref<1x2048xf32, #tpu.memory_space<vmem>>, vector<1x2048xf32>
    tpu.vector_store %arg2[%c0_1, %c0_2], %0 {strides = array<i32>} : memref<1x2048xf32, #tpu.memory_space<vmem>>, vector<1x2048xf32>,
    return
  }
  func.func @transform_0(%arg0: i32) -> (i32, i32) {
    %c0_i32 = arith.constant 0 : i32
    %c0_i32_0 = arith.constant 0 : i32
    return %arg0, %c0_i32 : i32, i32
  }
  func.func @transform_1(%arg0: i32) -> (i32, i32) {
    %c0_i32 = arith.constant 0 : i32
    %c0_i32_0 = arith.constant 0 : i32
    return %arg0, %c0_i32 : i32, i32
  }
}

</mosaic_0001>

<bundles_post_ra>
// kernel: tpu_custom_call.1
= control target key start
LH: loop header
LB: loop body
LE: loop exit
PB: predicated region body
PF: predicated region fallthrough
CT: control target
= control target key end

     0   :  { %6 = vsyncpa [#allocation3], 0  ;;  %s126_s0 = inlined_call_operand.hbm [shape: f32[1,2048], index: 0, kind: input, shape index: {}]   ;;  %s127_s1 = inlined_call_operand.hbm [shape: f32[1,2048], index: 1, kind: output, shape index: {}]  }
   0x1   :  { %7 = vsyncpa [#allocation4], 0  ;;  %s90_s6 = smov [#allocation2]   ;;  %s42_s10 = scalar_lea.hbm %s126_s0, 256 }
   0x2   :  { %s14_s7 = sshll.u32 %s90_s6, 4  ;;  %p43_p0 = scmp.ne.s32.totalorder %s126_s0, %s42_s10  ;;  %s15_s7 = int_to_ptr.vmem [resolvable:$true] %s14_s7 }
   0x3   :  { %p46_p1 = scmp.lt.u32.totalorder %s42_s10, %s126_s0 }
   0x5   :  { %p48_p2 = pnand %p46_p1, %p43_p0 }
   0x7   :  { %51 = shalt.err (!%p48_p2)
}
   0x8   :  { %s52_s15 = scalar_lea.vmem %s15_s7, 256  ;;  %p57_p4 = scmp.lt.s32.totalorder %s15_s7, %s15_s7 }
   0x9   :  { %p53_p3 = scmp.ne.s32.totalorder %s15_s7, %s52_s15  ;;  %p58_p5 = scmp.lt.s32.totalorder %s52_s15, %s52_s15 }
   0xb   :  { %p59_p6 = por %p58_p5, %p57_p4 }
   0xd   :  { %p60_p7 = pnand %p59_p6, %p53_p3 }
   0xf   :  { %63 = shalt.err (!%p60_p7)
}
  0x10   :  { %17 = dma.hbm_to_vmem [thread:$0]  %s126_s0, 256, %s15_s7, [#allocation3]  }
  0x11   :  { %86 = dma.done.wait [#allocation3], 256  }
  0x12   :  { %87 = vsyncadd [#allocation3], 4294967040  ;;  %s91_s18 = smov [#allocation5]   ;;  %v21_v0 = vld [vmem:[#allocation2] sm:$0xff]  ;;  %v22_v1 = vld [vmem:[#allocation2 + $0x8] sm:$0xff] }
  0x13   :  { %s31_s19 = sshll.u32 %s91_s18, 4  ;;  %23 = vst [vmem:[#allocation5] sm:$0xff] %v21_v0  ;;  %24 = vst [vmem:[#allocation5 + $0x8] sm:$0xff] %v22_v1  ;;  %s32_s19 = int_to_ptr.vmem [resolvable:$true] %s31_s19 }
  0x14   :  { %s64_s20 = scalar_lea.vmem %s32_s19, 256  ;;  %p69_p9 = scmp.lt.s32.totalorder %s32_s19, %s32_s19 }
  0x15   :  { %p65_p8 = scmp.ne.s32.totalorder %s32_s19, %s64_s20  ;;  %p70_p10 = scmp.lt.s32.totalorder %s64_s20, %s64_s20 }
  0x17   :  { %p71_p11 = por %p70_p10, %p69_p9 }
  0x19   :  { %p72_p12 = pnand %p71_p11, %p65_p8 }
  0x1b   :  { %75 = shalt.err (!%p72_p12)
}
  0x1c   :  { %s76_s0 = scalar_lea.hbm %s127_s1, 256 }
  0x1d   :  { %p77_p13 = scmp.ne.s32.totalorder %s127_s1, %s76_s0  ;;  %p80_p0 = scmp.lt.u32.totalorder %s76_s0, %s127_s1 }
  0x1f   :  { %p82_p1 = pnand %p80_p0, %p77_p13 }
  0x21   :  { %85 = shalt.err (!%p82_p1)
}
  0x22   :  { %34 = dma.vmem_to_hbm [thread:$0]  %s32_s19, 256, %s127_s1, [#allocation4]  }
  0x23   :  { %88 = dma.done.wait [#allocation4], 256  }
  0x24   :  { %89 = vsyncadd [#allocation4], 4294967040 }
  0x25   :  { %38 = vsyncpa [#allocation3], 1 }
  0x26   :  { %39 = vsyncpa [#allocation4], 1 }

</bundles_post_ra>
